<compile_context>
chip_gen: v7x
topology: tpu7x:2x2x1
jax: 0.10.0
libtpu: 0.0.40
codegen_flags: <defaults>
</compile_context>

<pallas_src>
import jax
import jax.numpy as jnp
from jax import lax
from jax.experimental import pallas as pl
from jax.experimental.pallas import tpu as pltpu


def _round_up(x, m):
    return (x + m - 1) // m * m


def _min_sublane(dtype):
    # f32 -> 8, bf16 -> 16, int8/fp8 -> 32 (packed sublane tile heights).
    return {4: 8, 2: 16, 1: 32}.get(jnp.dtype(dtype).itemsize, 8)


def _device_tile_defaults():
    """Per-generation default (tm, tn, tk, vmem_limit_bytes, is_v7x)."""
    try:
        kind = jax.devices()[0].device_kind.lower()
    except Exception:  # no accelerator info -> conservative defaults
        kind = ""
    if "7" in kind:                              # v7x: 64 MiB VMEM, 2 TCs/chip
        return 256, 1024, 1024, 32 << 20, True   # ~13 MiB double-buffered
    if "v6" in kind:                             # v6e: 128 MiB VMEM
        return 256, 1024, 2048, 96 << 20, False  # ~23 MiB -> raise scoped limit
    if "v5 lite" in kind or "v5e" in kind:       # v5e: 16 MiB default scoped
        return 256, 512, 1024, 32 << 20, False   # ~7.5 MiB
    return 256, 512, 512, None, False            # unknown chip: conservative


def _linear_kernel(x_ref, w_ref, b_ref, o_ref, acc_ref):
    # grid = (M//tm, N//tn, K//tk); K (reduction) is the last, "arbitrary" axis.
    k = pl.program_id(2)

    # Weight tile is in torch (tn, tk) layout -> contract lane dims of both.
    partial = lax.dot_general(
        x_ref[...], w_ref[...],
        dimension_numbers=(((1,), (1,)), ((), ())),
        preferred_element_type=jnp.float32)

    @pl.when(k == 0)
    def _():
        acc_ref[...] = partial          # first K step: write, no zero+add

    @pl.when(k > 0)
    def _():
        acc_ref[...] += partial

    @pl.when(k == pl.num_programs(2) - 1)
    def _():
        o_ref[...] = (acc_ref[...] + b_ref[...]).astype(o_ref.dtype)


def linear(x, weight, bias, *, tm=None, tn=None, tk=None, compute_dtype=None):
    """PyTorch F.linear semantics: x(..., K) @ weight(N, K).T + bias(N,)."""
    orig_shape = x.shape
    K = orig_shape[-1]
    x2 = x.reshape(-1, K)
    M = x2.shape[0]
    N, Kw = weight.shape
    assert Kw == K, (Kw, K)

    out_dtype = x.dtype
    if compute_dtype is not None:
        # bf16 operands, f32 accumulation (preferred_element_type in-kernel).
        x2 = x2.astype(compute_dtype)
        weight = weight.astype(compute_dtype)

    dtm, dtn, dtk, vmem_limit, is_v7 = _device_tile_defaults()
    tm = dtm if tm is None else tm
    tn = dtn if tn is None else tn
    tk = dtk if tk is None else tk

    sub = _min_sublane(x2.dtype)
    # Clamp tiles to the (aligned) problem size.  Small-M inference shapes get
    # a single M block so each weight tile is DMA'd from HBM exactly once.
    tm = min(tm, _round_up(M, sub))
    tn = min(tn, _round_up(N, 128))
    tk = min(tk, _round_up(K, 128))

    # v7x megacore: keep >= 2 blocks on a parallel axis so both TCs have work.
    if is_v7 and _round_up(M, tm) // tm == 1 and _round_up(N, tn) // tn == 1 \
            and N > 128:
        tn = max(128, _round_up(-(-N // 2), 128))

    Mp, Np, Kp = _round_up(M, tm), _round_up(N, tn), _round_up(K, tk)

    # Pad only when not already aligned.  Zero-padded K contributes nothing to
    # the dot product; padded M/N rows/cols are sliced away at the end.
    xp = x2 if (Mp, Kp) == (M, K) else jnp.pad(x2, ((0, Mp - M), (0, Kp - K)))
    wp = weight if (Np, Kp) == (N, K) else jnp.pad(weight,
                                                   ((0, Np - N), (0, Kp - K)))
    bp = (bias if Np == N else jnp.pad(bias, (0, Np - N))).reshape(1, Np)

    grid = (Mp // tm, Np // tn, Kp // tk)

    cost = pl.CostEstimate(
        flops=2 * M * N * K,
        transcendentals=0,
        bytes_accessed=(x2.size * x2.dtype.itemsize
                        + weight.size * weight.dtype.itemsize
                        + M * N * jnp.dtype(out_dtype).itemsize))

    cp_kwargs = dict(dimension_semantics=("parallel", "parallel", "arbitrary"))
    if vmem_limit is not None:
        cp_kwargs["vmem_limit_bytes"] = int(vmem_limit)

    out = pl.pallas_call(
        _linear_kernel,
        out_shape=jax.ShapeDtypeStruct((Mp, Np), out_dtype),
        grid_spec=pltpu.PrefetchScalarGridSpec(
            num_scalar_prefetch=0,
            grid=grid,
            in_specs=[
                pl.BlockSpec((tm, tk), lambda i, j, k: (i, k)),   # x tile
                pl.BlockSpec((tn, tk), lambda i, j, k: (j, k)),   # W tile (N,K)
                pl.BlockSpec((1, tn), lambda i, j, k: (0, j)),    # bias tile
            ],
            out_specs=pl.BlockSpec((tm, tn), lambda i, j, k: (i, j)),
            scratch_shapes=[pltpu.VMEM((tm, tn), jnp.float32)],
        ),
        compiler_params=pltpu.CompilerParams(**cp_kwargs),
        cost_estimate=cost,
    )(xp, wp, bp)

    return out[:M, :N].reshape(*orig_shape[:-1], N)


# ----------------------------------------------------------------------------
# Parameter init matching the PyTorch module (init='he', gain=1.0):
#   weight ~ N(0, sqrt(1/in_features)), bias = 0.
# ----------------------------------------------------------------------------
def init_params(key, in_features, out_features, gain=1.0):
    stdv = gain * (1.0 / in_features) ** 0.5
    kw, _ = jax.random.split(key)
    weight = stdv * jax.random.normal(kw, (out_features, in_features),
                                      jnp.float32)
    bias = jnp.zeros((out_features,), jnp.float32)
    return weight, bias


def reference_forward(x, weight, bias):
    return x @ weight.T + bias


if __name__ == "__main__":
    batch, in_features, out_features = 2, 256, 32

    key = jax.random.PRNGKey(0)
    key, kx, kp = jax.random.split(key, 3)
    weight, bias = init_params(kp, in_features, out_features)

    # 2-D input.
    x = jax.random.normal(kx, (batch, in_features), jnp.float32)
    out = jax.block_until_ready(linear(x, weight, bias))
    assert out.shape == (batch, out_features), out.shape
    ref = reference_forward(x, weight, bias)
    if not jnp.allclose(out, ref, atol=2e-3, rtol=2e-3):
        raise AssertionError(
            f"mismatch: max abs err = {float(jnp.max(jnp.abs(out - ref)))}")

    # 3-D input (exercises the leading-dim flatten / reshape path).
    key, kx3 = jax.random.split(key)
    x3 = jax.random.normal(kx3, (batch, 8, in_features), jnp.float32)
    out3 = jax.block_until_ready(linear(x3, weight, bias))
    assert out3.shape == (batch, 8, out_features), out3.shape
    ref3 = reference_forward(x3, weight, bias)
    if not jnp.allclose(out3, ref3, atol=2e-3, rtol=2e-3):
        raise AssertionError(
            f"mismatch(3d): max abs err = {float(jnp.max(jnp.abs(out3 - ref3)))}")

    print("KERNEL_OK")
</pallas_src>

<mosaic_0001>
module attributes {stable_mosaic.version = 11 : i64} {
  func.func @_linear_kernel(%arg0: i32, %arg1: i32, %arg2: i32, %arg3: memref<8x256xf32, #tpu.memory_space<vmem>>, %arg4: memref<128x256xf32, #tpu.memory_space<vmem>>, %arg5: memref<1x128xf32, #tpu.memory_space<vmem>>, %arg6: memref<8x128xf32, #tpu.memory_space<vmem>>, %arg7: memref<8x128xf32, #tpu.memory_space<vmem>>) attributes {dimension_semantics = [#tpu.dimension_semantics<parallel>, #tpu.dimension_semantics<parallel>, #tpu.dimension_semantics<arbitrary>], iteration_bounds = array<i64: 1, 1, 1>, scalar_prefetch = 0 : i64, scratch_operands = 1 : i64, tpu.core_type = #tpu.core_type<tc>, window_params = [{transform_indices = @transform_0, window_bounds = array<i64: 8, 256>}, {transform_indices = @transform_1, window_bounds = array<i64: 128, 256>}, {transform_indices = @transform_2, window_bounds = array<i64: 1, 128>}, {transform_indices = @transform_3, window_bounds = array<i64: 8, 128>}]} {
    %c0 = arith.constant 0 : index
    %c0_0 = arith.constant 0 : index
    %0 = vector.load %arg3[%c0, %c0_0] : memref<8x256xf32, #tpu.memory_space<vmem>>, vector<8x256xf32>
    %c0_1 = arith.constant 0 : index
    %c0_2 = arith.constant 0 : index
    %1 = vector.load %arg4[%c0_1, %c0_2] : memref<128x256xf32, #tpu.memory_space<vmem>>, vector<128x256xf32>
    %cst = arith.constant dense<0.000000e+00> : vector<8x128xf32>
    %2 = tpu.matmul %0, %1, %cst {dimension_numbers = #tpu.dot_dimension_numbers<[1], [1], [0], [0], [0, 0, 1, 0], [], []>} : vector<8x256xf32>, vector<128x256xf32>, vector<8x128xf32> -> vector<8x128xf32>
    %c0_i32 = arith.constant 0 : i32
    %3 = arith.cmpi eq, %arg2, %c0_i32 : i32
    %4 = arith.extui %3 : i1 to i32
    %c0_i32_3 = arith.constant 0 : i32
    %5 = arith.cmpi ne, %4, %c0_i32_3 : i32
    scf.if %5 {
      %c0_8 = arith.constant 0 : index
      %c0_9 = arith.constant 0 : index
      %12 = vector.load %arg7[%c0_8, %c0_9] : memref<8x128xf32, #tpu.memory_space<vmem>>, vector<8x128xf32>
      tpu.vector_store %arg7[%c0_8, %c0_9], %2 {strides = array<i32>} : memref<8x128xf32, #tpu.memory_space<vmem>>, vector<8x128xf32>,
    } else {
    }
    %c0_i32_4 = arith.constant 0 : i32
    %6 = arith.cmpi sgt, %arg2, %c0_i32_4 : i32
    %7 = arith.extui %6 : i1 to i32
    %c0_i32_5 = arith.constant 0 : i32
    %8 = arith.cmpi ne, %7, %c0_i32_5 : i32
    scf.if %8 {
      %c0_8 = arith.constant 0 : index
      %c0_9 = arith.constant 0 : index
      %12 = vector.load %arg7[%c0_8, %c0_9] : memref<8x128xf32, #tpu.memory_space<vmem>>, vector<8x128xf32>
      %13 = arith.addf %12, %2 : vector<8x128xf32>
      %c0_10 = arith.constant 0 : index
      %c0_11 = arith.constant 0 : index
      %14 = vector.load %arg7[%c0_10, %c0_11] : memref<8x128xf32, #tpu.memory_space<vmem>>, vector<8x128xf32>
      tpu.vector_store %arg7[%c0_10, %c0_11], %13 {strides = array<i32>} : memref<8x128xf32, #tpu.memory_space<vmem>>, vector<8x128xf32>,
    } else {
    }
    %c0_i32_6 = arith.constant 0 : i32
    %9 = arith.cmpi eq, %arg2, %c0_i32_6 : i32
    %10 = arith.extui %9 : i1 to i32
    %c0_i32_7 = arith.constant 0 : i32
    %11 = arith.cmpi ne, %10, %c0_i32_7 : i32
    scf.if %11 {
      %c0_8 = arith.constant 0 : index
      %c0_9 = arith.constant 0 : index
      %12 = vector.load %arg7[%c0_8, %c0_9] : memref<8x128xf32, #tpu.memory_space<vmem>>, vector<8x128xf32>
      %c0_10 = arith.constant 0 : index
      %c0_11 = arith.constant 0 : index
      %13 = vector.load %arg5[%c0_10, %c0_11] : memref<1x128xf32, #tpu.memory_space<vmem>>, vector<1x128xf32>
      %14 = vector.broadcast %13 : vector<1x128xf32> to vector<8x128xf32>
      %15 = arith.addf %12, %14 : vector<8x128xf32>
      %c0_12 = arith.constant 0 : index
      %c0_13 = arith.constant 0 : index
      %16 = vector.load %arg6[%c0_12, %c0_13] : memref<8x128xf32, #tpu.memory_space<vmem>>, vector<8x128xf32>
      tpu.vector_store %arg6[%c0_12, %c0_13], %15 {strides = array<i32>} : memref<8x128xf32, #tpu.memory_space<vmem>>, vector<8x128xf32>,
    } else {
    }
    return
  }
  func.func @transform_0(%arg0: i32, %arg1: i32, %arg2: i32) -> (i32, i32) {
    %c0_i32 = arith.constant 0 : i32
    return %arg0, %arg2 : i32, i32
  }
  func.func @transform_1(%arg0: i32, %arg1: i32, %arg2: i32) -> (i32, i32) {
    %c0_i32 = arith.constant 0 : i32
    return %arg1, %arg2 : i32, i32
  }
  func.func @transform_2(%arg0: i32, %arg1: i32, %arg2: i32) -> (i32, i32) {
    %c0_i32 = arith.constant 0 : i32
    %c0_i32_0 = arith.constant 0 : i32
    return %c0_i32, %arg1 : i32, i32
  }
  func.func @transform_3(%arg0: i32, %arg1: i32, %arg2: i32) -> (i32, i32) {
    %c0_i32 = arith.constant 0 : i32
    return %arg0, %arg1 : i32, i32
  }
}

</mosaic_0001>

<bundles_post_ra>
// kernel: tpu_custom_call.1
= control target key start
LH: loop header
LB: loop body
LE: loop exit
PB: predicated region body
PF: predicated region fallthrough
CT: control target
= control target key end

     0   :  { %8 = vsyncpa [#allocation4], 0  ;;  %s367_s0 = inlined_call_operand.hbm [shape: f32[8,256], index: 0, kind: input, shape index: {}]   ;;  %s368_s1 = inlined_call_operand.hbm [shape: f32[128,256], index: 1, kind: input, shape index: {}]   ;;  %s369_s2 = inlined_call_operand.vmem [shape: f32[1,128], index: 2, kind: input, shape index: {}]   ;;  %s370_s3 = inlined_call_operand.hbm [shape: f32[8,128], index: 3, kind: output, shape index: {}]  }
   0x1   :  { %9 = vsyncpa [#allocation7], 0 }
   0x2   :  { %10 = vsyncpa [#allocation5], 0  ;;  %s296_s12 = smov [#allocation3]   ;;  %s297_s14 = smov [#allocation6]  }
   0x3   :  { %s17_s13 = sshll.u32 %s296_s12, 4  ;;  %s26_s15 = sshll.u32 %s297_s14, 4  ;;  %s18_s13 = int_to_ptr.vmem [resolvable:$true] %s17_s13  ;;  %s321_s15 = int_to_ptr.vmem [resolvable:$true] %s26_s15 }
   0x4   :  { %s224_s18 = scalar_lea.hbm %s367_s0, 256 }
   0x5   :  { %p225_p0 = scmp.ne.s32.totalorder %s367_s0, %s224_s18  ;;  %p228_p1 = scmp.lt.u32.totalorder %s224_s18, %s367_s0 }
   0x7   :  { %p230_p2 = pnand %p228_p1, %p225_p0 }
   0x9   :  { %233 = shalt.err (!%p230_p2)
}
   0xa   :  { %s234_s23 = scalar_lea.vmem %s18_s13, 256  ;;  %p239_p4 = scmp.lt.s32.totalorder %s18_s13, %s18_s13 }
   0xb   :  { %p235_p3 = scmp.ne.s32.totalorder %s18_s13, %s234_s23  ;;  %p240_p5 = scmp.lt.s32.totalorder %s234_s23, %s234_s23 }
   0xd   :  { %p241_p6 = por %p240_p5, %p239_p4 }
   0xf   :  { %p242_p7 = pnand %p241_p6, %p235_p3 }
  0x11   :  { %245 = shalt.err (!%p242_p7)
}
  0x12   :  { %20 = dma.hbm_to_vmem [thread:$0]  %s367_s0, 256, %s18_s13, [#allocation4]  }
  0x13   :  { %s246_s28 = scalar_lea.hbm %s368_s1, 4096 }
  0x14   :  { %p247_p8 = scmp.ne.s32.totalorder %s368_s1, %s246_s28  ;;  %p250_p9 = scmp.lt.u32.totalorder %s246_s28, %s368_s1 }
  0x16   :  { %p252_p10 = pnand %p250_p9, %p247_p8 }
  0x18   :  { %255 = shalt.err (!%p252_p10)
}
  0x19   :  { %s256_s6 = scalar_lea.vmem %s321_s15, 4096  ;;  %p261_p12 = scmp.lt.s32.totalorder %s321_s15, %s321_s15 }
  0x1a   :  { %p257_p11 = scmp.ne.s32.totalorder %s321_s15, %s256_s6  ;;  %p262_p13 = scmp.lt.s32.totalorder %s256_s6, %s256_s6 }
  0x1c   :  { %p263_p0 = por %p262_p13, %p261_p12 }
  0x1e   :  { %p264_p1 = pnand %p263_p0, %p257_p11 }
  0x20   :  { %267 = shalt.err (!%p264_p1)
}
  0x21   :  { %s298_s0 = smov 256   ;;  %s299_s7 = smov 16  }
  0x22   :  { %32 = dma.hbm_to_vmem [thread:$0]  %s368_s1, 4096, %s321_s15, [#allocation7], %s298_s0, %s298_s0, %s299_s7  }
  0x23   :  { %290 = dma.done.wait [#allocation4], 256  }
  0x24   :  { %291 = vsyncadd [#allocation4], 4294967040 }
  0x25   :  { %292 = dma.done.wait [#allocation7], 4096  }
  0x26   :  { %293 = vsyncadd [#allocation7], 4294963200  ;;  %v44_v0 = vld [vmem:[#allocation6 + $0x8] sm:$0xff]  ;;  %v46_v1 = vld [vmem:[#allocation6 + $0x18] sm:$0xff]  ;;  %s300_s11 = smov [#allocation8]  }
  0x27   :  { %v43_v2 = vld [vmem:[#allocation6] sm:$0xff]  ;;  %v187_v3 = vpack.c.bf16 %v46_v1, %v44_v0  ;;  %v45_v4 = vld [vmem:[#allocation6 + $0x10] sm:$0xff]  ;;  %v48_v5 = vld [vmem:[#allocation6 + $0x28] sm:$0xff]  ;;  %s176_s12 = sshll.u32 %s300_s11, 4  ;;  %s177_s12 = int_to_ptr.vmem [resolvable:$true] %s176_s12 }
  0x28   :  { %v50_v6 = vld [vmem:[#allocation6 + $0x38] sm:$0xff]  ;;  %v189_v7 = vpack.c.bf16 %v45_v4, %v43_v2  ;;  %v47_v9 = vld [vmem:[#allocation6 + $0x20] sm:$0xff]  ;;  %v49_v10 = vld [vmem:[#allocation6 + $0x30] sm:$0xff]  ;;  %s268_s13 = scalar_lea.vmem %s177_s12, 128  ;;  %p273_p3 = scmp.lt.s32.totalorder %s177_s12, %s177_s12 }
  0x29   :  { %v191_v8 = vpack.c.bf16 %v50_v6, %v48_v5  ;;  %188 = vmatprep.subr.bf16.mxu0 %v187_v3  ;;  %v52_v11 = vld [vmem:[#allocation6 + $0x48] sm:$0xff]  ;;  %v54_v12 = vld [vmem:[#allocation6 + $0x58] sm:$0xff]  ;;  %v193_v13 = vpack.c.bf16 %v49_v10, %v47_v9  ;;  %v51_v16 = vld [vmem:[#allocation6 + $0x40] sm:$0xff]  ;;  %p269_p2 = scmp.ne.s32.totalorder %s177_s12, %s268_s13  ;;  %p274_p4 = scmp.lt.s32.totalorder %s268_s13, %s268_s13 }
  0x2a   :  { %190 = vmatpush1.bf16.xpose.msra.mxu0 %v189_v7  ;;  %v195_v14 = vpack.c.bf16 %v54_v12, %v52_v11  ;;  %v42_v15 = vld [vmem:[#allocation3 + $0x8] sm:$0xff]  ;;  %v53_v17 = vld [vmem:[#allocation6 + $0x50] sm:$0xff]  ;;  %v56_v18 = vld [vmem:[#allocation6 + $0x68] sm:$0xff] }
  0x2b   :  { %192 = vmatprep.subr.bf16.mxu0 %v191_v8  ;;  %139 = vmatprep.mubr.f32.mxu0 %v42_v15  ;;  %v58_v19 = vld [vmem:[#allocation6 + $0x78] sm:$0xff]  ;;  %v197_v20 = vpack.c.bf16 %v53_v17, %v51_v16  ;;  %v55_v22 = vld [vmem:[#allocation6 + $0x60] sm:$0xff]  ;;  %v57_v23 = vld [vmem:[#allocation6 + $0x70] sm:$0xff]  ;;  %p275_p5 = por %p274_p4, %p273_p3 }
  0x2c   :  { %v199_v21 = vpack.c.bf16 %v58_v19, %v56_v18  ;;  %v60_v24 = vld [vmem:[#allocation6 + $0x88] sm:$0xff]  ;;  %v62_v25 = vld [vmem:[#allocation6 + $0x98] sm:$0xff]  ;;  %v201_v26 = vpack.c.bf16 %v57_v23, %v55_v22  ;;  %v59_v28 = vld [vmem:[#allocation6 + $0x80] sm:$0xff] }
  0x2d   :  { %v203_v27 = vpack.c.bf16 %v62_v25, %v60_v24  ;;  %v61_v29 = vld [vmem:[#allocation6 + $0x90] sm:$0xff]  ;;  %v64_v30 = vld [vmem:[#allocation6 + $0xa8] sm:$0xff]  ;;  %v66_v31 = vld [vmem:[#allocation6 + $0xb8] sm:$0xff]  ;;  %p276_p6 = pnand %p275_p5, %p269_p2 }
  0x2e   :  { %v205_v32 = vpack.c.bf16 %v61_v29, %v59_v28  ;;  %v207_v33 = vpack.c.bf16 %v66_v31, %v64_v30  ;;  %v63_v34 = vld [vmem:[#allocation6 + $0xa0] sm:$0xff]  ;;  %v65_v35 = vld [vmem:[#allocation6 + $0xb0] sm:$0xff]  ;;  %v68_v36 = vld [vmem:[#allocation6 + $0xc8] sm:$0xff] }
  0x2f   :  { %v70_v37 = vld [vmem:[#allocation6 + $0xd8] sm:$0xff]  ;;  %v209_v38 = vpack.c.bf16 %v65_v35, %v63_v34  ;;  %v67_v40 = vld [vmem:[#allocation6 + $0xc0] sm:$0xff]  ;;  %v69_v41 = vld [vmem:[#allocation6 + $0xd0] sm:$0xff] }
  0x30   :  { %v211_v39 = vpack.c.bf16 %v70_v37, %v68_v36  ;;  %v72_v42 = vld [vmem:[#allocation6 + $0xe8] sm:$0xff]  ;;  %v74_v43 = vld [vmem:[#allocation6 + $0xf8] sm:$0xff]  ;;  %v213_v44 = vpack.c.bf16 %v69_v41, %v67_v40  ;;  %v71_v46 = vld [vmem:[#allocation6 + $0xe0] sm:$0xff] }
  0x31   :  { %v215_v45 = vpack.c.bf16 %v74_v43, %v72_v42  ;;  %v73_v47 = vld [vmem:[#allocation6 + $0xf0] sm:$0xff] }
  0x32   :  { %194 = vmatpush1.bf16.xpose.msra.mxu0 %v193_v13  ;;  %v217_v48 = vpack.c.bf16 %v73_v47, %v71_v46  ;;  %v41_v49 = vld [vmem:[#allocation3] sm:$0xff] }
  0x33   :  { %196 = vmatprep.subr.bf16.mxu0 %v195_v14  ;;  %v186_v50 = vld [vmem:[%s369_s2] ss:$0 sm:$0xff] }
  0x3a   :  { %198 = vmatpush1.bf16.xpose.msra.mxu0 %v197_v20 }
  0x3b   :  { %200 = vmatprep.subr.bf16.mxu0 %v199_v21 }
  0x42   :  { %202 = vmatpush1.bf16.xpose.msra.mxu0 %v201_v26 }
  0x43   :  { %204 = vmatprep.subr.bf16.mxu0 %v203_v27 }
  0x4a   :  { %206 = vmatpush1.bf16.xpose.msra.mxu0 %v205_v32 }
  0x4b   :  { %208 = vmatprep.subr.bf16.mxu0 %v207_v33 }
  0x52   :  { %210 = vmatpush1.bf16.xpose.msra.mxu0 %v209_v38 }
  0x53   :  { %212 = vmatprep.subr.bf16.mxu0 %v211_v39 }
  0x5a   :  { %214 = vmatpush1.bf16.xpose.msra.mxu0 %v213_v44 }
  0x5b   :  { %216 = vmatprep.subr.bf16.mxu0 %v215_v45 }
  0x62   :  { %218 = vmatpush1.bf16.xpose.msra.mxu0 %v217_v48 }
  0x69   :  { %140 = vmatmul.mubr.f32.vlgmr.msra.gmra.mrb[0].mxu0 %v41_v49 }
 0x13c   :  { %v141_v51 = vpop.f32.mrb[0].mxu0 }
 0x13d   :  { %v168_v52 = vadd.f32 %v186_v50, %v141_v51  ;;  %v143_v53 = vpop.f32.mrb[1].mxu0 }
 0x13f   :  { %169 = vst [vmem:[#allocation8] sm:$0xff] %v168_v52 }
 0x140   :  { %279 = shalt.err (!%p276_p6)
}
 0x141   :  { %s280_s16 = scalar_lea.hbm %s370_s3, 128 }
 0x142   :  { %p281_p7 = scmp.ne.s32.totalorder %s370_s3, %s280_s16  ;;  %p284_p8 = scmp.lt.u32.totalorder %s280_s16, %s370_s3 }
 0x144   :  { %p286_p9 = pnand %p284_p8, %p281_p7 }
 0x146   :  { %289 = shalt.err (!%p286_p9)
}
 0x147   :  { %179 = dma.vmem_to_hbm [thread:$0]  %s177_s12, 128, %s370_s3, [#allocation5]  }
 0x148   :  { %294 = dma.done.wait [#allocation5], 128  }
 0x149   :  { %295 = vsyncadd [#allocation5], 4294967168 }
 0x14a   :  { %183 = vsyncpa [#allocation4], 1 }
 0x14b   :  { %184 = vsyncpa [#allocation7], 1 }
 0x14c   :  { %185 = vsyncpa [#allocation5], 1 }

</bundles_post_ra>
